<compile_context>
chip_gen: v6e
topology: v6e:2x2x1
jax: 0.10.0
libtpu: 0.0.40
codegen_flags: <defaults>
</compile_context>

<pallas_src>
import functools

import jax
import jax.numpy as jnp
from jax import lax
from jax.experimental import pallas as pl
from jax.experimental.pallas import tpu as pltpu


# ---------------------------------------------------------------------------
# Kernel
# ---------------------------------------------------------------------------
def _balanced_softmax_kernel(num_classes,
                             logits_ref, log_prior_ref, labels_ref,
                             out_ref,
                             m_ref, s_ref, p_ref):
    """Online-softmax cross entropy over class chunks.

    Grid: (batch_tile i, class_tile j). Scratch (per batch tile, resident
    across j): m = running row max, s = running sum(exp), p = picked logit.
    """
    j = pl.program_id(1)
    tn, tc = logits_ref.shape

    @pl.when(j == 0)
    def _init():
        m_ref[...] = jnp.full_like(m_ref, -jnp.inf)
        s_ref[...] = jnp.zeros_like(s_ref)
        p_ref[...] = jnp.zeros_like(p_ref)

    # Widen to f32 on load (v5e has no native bf16 VPU/EUP path).
    chunk = (logits_ref[...].astype(jnp.float32)
             + log_prior_ref[...].astype(jnp.float32))          # (tn, tc)

    # Global class ids of this chunk; mask padded class columns.
    col_ids = j * tc + lax.broadcasted_iota(jnp.int32, (tn, tc), 1)
    chunk = jnp.where(col_ids < num_classes, chunk, -jnp.inf)

    # Online (flash-style) logsumexp update.
    m_old = m_ref[...]
    m_new = jnp.maximum(m_old, jnp.max(chunk, axis=-1, keepdims=True))
    s_ref[...] = (s_ref[...] * jnp.exp(m_old - m_new)
                  + jnp.sum(jnp.exp(chunk - m_new), axis=-1, keepdims=True))
    m_ref[...] = m_new

    # Gather adjusted[i, label_i] for labels that land in this chunk
    # (one-hot select; no dynamic gather on TPU).
    labels = labels_ref[...]                                     # (tn, 1) int32
    onehot = col_ids == labels
    p_ref[...] = p_ref[...] + jnp.sum(
        jnp.where(onehot, chunk, 0.0), axis=-1, keepdims=True)

    @pl.when(j == pl.num_programs(1) - 1)
    def _finalize():
        lse = m_ref[...] + jnp.log(s_ref[...])
        per_row = lse - p_ref[...]
        # Out-of-range labels (e.g. ignore_index=-100) contribute 0;
        # the wrapper excludes them from the mean denominator.
        valid = (labels_ref[...] >= 0) & (labels_ref[...] < num_classes)
        out_ref[...] = jnp.where(valid, per_row, 0.0).astype(out_ref.dtype)


# ---------------------------------------------------------------------------
# Tile sizing / wrapper
# ---------------------------------------------------------------------------
def _vmem_capacity_bytes():
    try:
        return int(pltpu.get_tpu_info().vmem_capacity_bytes)
    except Exception:
        return 64 * 1024 * 1024  # conservative (v7x per-TC VMEM)


def _choose_tiles(n, c, itemsize, vmem_bytes):
    # Lane-dense class tile: full C when modest, otherwise a 128-multiple chunk.
    tile_c = c if c <= 4096 else 2048
    # Budget ~1/4 of physical VMEM for the double-buffered logits tiles,
    # leaving headroom for prior/labels/output buffers and scratch.
    budget = vmem_bytes // 4
    max_tile_n = max(8, budget // max(1, 2 * tile_c * itemsize))
    tile_n = int(min(512, max_tile_n))
    tile_n = max(8, (tile_n // 8) * 8)      # keep sublane-aligned
    if tile_n >= n:
        tile_n = n                           # full dim is always legal
    return tile_n, tile_c


def balanced_softmax_loss(logits, labels, log_prior):
    """logits: [N, C] (f32 or bf16), labels: [N] int, log_prior: [1, C] -> scalar f32."""
    n, c = logits.shape
    labels2d = labels.astype(jnp.int32).reshape(n, 1)
    log_prior2d = jnp.asarray(log_prior, dtype=jnp.float32).reshape(1, c)

    vmem_bytes = _vmem_capacity_bytes()
    itemsize = jnp.dtype(logits.dtype).itemsize
    tile_n, tile_c = _choose_tiles(n, c, itemsize, vmem_bytes)
    grid = (pl.cdiv(n, tile_n), pl.cdiv(c, tile_c))

    per_row = pl.pallas_call(
        functools.partial(_balanced_softmax_kernel, c),
        out_shape=jax.ShapeDtypeStruct((n, 1), jnp.float32),
        grid_spec=pltpu.PrefetchScalarGridSpec(
            num_scalar_prefetch=0,
            grid=grid,
            in_specs=[
                pl.BlockSpec((tile_n, tile_c), lambda i, j: (i, j)),  # logits
                pl.BlockSpec((1, tile_c), lambda i, j: (0, j)),       # log_prior
                pl.BlockSpec((tile_n, 1), lambda i, j: (i, 0)),       # labels
            ],
            out_specs=pl.BlockSpec((tile_n, 1), lambda i, j: (i, 0)),
            scratch_shapes=[
                pltpu.VMEM((tile_n, 1), jnp.float32),  # running max
                pltpu.VMEM((tile_n, 1), jnp.float32),  # running sum(exp)
                pltpu.VMEM((tile_n, 1), jnp.float32),  # picked logit
            ],
        ),
        compiler_params=pltpu.CompilerParams(
            dimension_semantics=("parallel", "arbitrary"),
            vmem_limit_bytes=int(vmem_bytes * 0.75),
        ),
    )(logits, log_prior2d, labels2d)

    # Mean over non-ignored rows (matches F.cross_entropy: plain mean when all
    # labels are valid; ignore_index-style rows excluded otherwise).
    valid = (labels2d[:, 0] >= 0) & (labels2d[:, 0] < c)
    count = jnp.sum(valid.astype(jnp.float32))
    return jnp.sum(per_row[:, 0]) / count


def make_log_prior(cls_num_list):
    """Deterministic parameter setup mirroring BalancedSoftmaxLoss.__init__."""
    cls_num = jnp.asarray(cls_num_list, dtype=jnp.float32)
    cls_prior = cls_num / jnp.sum(cls_num)
    return jnp.log(cls_prior)[None, :]                            # (1, C)


# ---------------------------------------------------------------------------
# Demo / correctness check
# ---------------------------------------------------------------------------
if __name__ == "__main__":
    # small, deterministic example: batch=8, num_classes=128
    N, C = 8, 128
    key = jax.random.PRNGKey(0)
    k_logits, k_labels = jax.random.split(key)

    logits = jax.random.normal(k_logits, (N, C), dtype=jnp.float32)
    labels = jax.random.randint(k_labels, (N,), 0, C, dtype=jnp.int32)

    # deterministic, imbalanced class-count list (as __init__ would receive)
    cls_num_list = jnp.arange(1, C + 1, dtype=jnp.float32)
    log_prior = make_log_prior(cls_num_list)

    # f32 path
    loss = balanced_softmax_loss(logits, labels, log_prior)
    jax.block_until_ready(loss)

    adjusted = logits + log_prior
    ref = jnp.mean(
        jax.nn.logsumexp(adjusted, axis=-1)
        - jnp.take_along_axis(adjusted, labels[:, None], axis=-1)[:, 0])
    assert jnp.allclose(loss, ref, atol=1e-5, rtol=1e-5), (loss, ref)

    # bf16 path (no wrapper upcast; kernel widens to f32 internally)
    logits_bf16 = logits.astype(jnp.bfloat16)
    loss_bf16 = balanced_softmax_loss(logits_bf16, labels, log_prior)
    jax.block_until_ready(loss_bf16)

    adjusted_bf16 = logits_bf16.astype(jnp.float32) + log_prior
    ref_bf16 = jnp.mean(
        jax.nn.logsumexp(adjusted_bf16, axis=-1)
        - jnp.take_along_axis(adjusted_bf16, labels[:, None], axis=-1)[:, 0])
    assert jnp.allclose(loss_bf16, ref_bf16, atol=1e-4, rtol=1e-4), (loss_bf16, ref_bf16)

    print("KERNEL_OK")
</pallas_src>

<mosaic_0001>
module attributes {stable_mosaic.version = 11 : i64} {
  func.func @_balanced_softmax_kernel(%arg0: i32, %arg1: i32, %arg2: memref<8x128xf32, #tpu.memory_space<vmem>>, %arg3: memref<1x128xf32, #tpu.memory_space<vmem>>, %arg4: memref<8x1xi32, #tpu.memory_space<vmem>>, %arg5: memref<8x1xf32, #tpu.memory_space<vmem>>, %arg6: memref<8x1xf32, #tpu.memory_space<vmem>>, %arg7: memref<8x1xf32, #tpu.memory_space<vmem>>, %arg8: memref<8x1xf32, #tpu.memory_space<vmem>>) attributes {dimension_semantics = [#tpu.dimension_semantics<parallel>, #tpu.dimension_semantics<arbitrary>], iteration_bounds = array<i64: 1, 1>, scalar_prefetch = 0 : i64, scratch_operands = 3 : i64, tpu.core_type = #tpu.core_type<tc>, window_params = [{transform_indices = @transform_0, window_bounds = array<i64: 8, 128>}, {transform_indices = @transform_1, window_bounds = array<i64: 1, 128>}, {transform_indices = @transform_2, window_bounds = array<i64: 8, 1>}, {transform_indices = @transform_3, window_bounds = array<i64: 8, 1>}]} {
    %c0_i32 = arith.constant 0 : i32
    %0 = arith.cmpi eq, %arg1, %c0_i32 : i32
    %1 = arith.extui %0 : i1 to i32
    %c0_i32_0 = arith.constant 0 : i32
    %2 = arith.cmpi ne, %1, %c0_i32_0 : i32
    scf.if %2 {
      %cst_25 = arith.constant 0xFF800000 : f32
      %44 = vector.broadcast %cst_25 : f32 to vector<8x1xf32>
      %c0_26 = arith.constant 0 : index
      %c0_27 = arith.constant 0 : index
      %45 = vector.load %arg6[%c0_26, %c0_27] : memref<8x1xf32, #tpu.memory_space<vmem>>, vector<8x1xf32>
      tpu.vector_store %arg6[%c0_26, %c0_27], %44 {strides = array<i32>} : memref<8x1xf32, #tpu.memory_space<vmem>>, vector<8x1xf32>,
      %cst_28 = arith.constant 0.000000e+00 : f32
      %46 = vector.broadcast %cst_28 : f32 to vector<8x1xf32>
      %c0_29 = arith.constant 0 : index
      %c0_30 = arith.constant 0 : index
      %47 = vector.load %arg7[%c0_29, %c0_30] : memref<8x1xf32, #tpu.memory_space<vmem>>, vector<8x1xf32>
      tpu.vector_store %arg7[%c0_29, %c0_30], %46 {strides = array<i32>} : memref<8x1xf32, #tpu.memory_space<vmem>>, vector<8x1xf32>,
      %cst_31 = arith.constant 0.000000e+00 : f32
      %48 = vector.broadcast %cst_31 : f32 to vector<8x1xf32>
      %c0_32 = arith.constant 0 : index
      %c0_33 = arith.constant 0 : index
      %49 = vector.load %arg8[%c0_32, %c0_33] : memref<8x1xf32, #tpu.memory_space<vmem>>, vector<8x1xf32>
      tpu.vector_store %arg8[%c0_32, %c0_33], %48 {strides = array<i32>} : memref<8x1xf32, #tpu.memory_space<vmem>>, vector<8x1xf32>,
    } else {
    }
    %c0 = arith.constant 0 : index
    %c0_1 = arith.constant 0 : index
    %3 = vector.load %arg2[%c0, %c0_1] : memref<8x128xf32, #tpu.memory_space<vmem>>, vector<8x128xf32>
    %c0_2 = arith.constant 0 : index
    %c0_3 = arith.constant 0 : index
    %4 = vector.load %arg3[%c0_2, %c0_3] : memref<1x128xf32, #tpu.memory_space<vmem>>, vector<1x128xf32>
    %5 = vector.broadcast %4 : vector<1x128xf32> to vector<8x128xf32>
    %6 = arith.addf %3, %5 : vector<8x128xf32>
    %c128_i32 = arith.constant 128 : i32
    %7 = arith.muli %arg1, %c128_i32 : i32
    %8 = tpu.iota {dimensions = array<i32: 1>} : vector<8x128xi32>
    %9 = vector.broadcast %7 : i32 to vector<8x128xi32>
    %10 = arith.addi %9, %8 : vector<8x128xi32>
    %c128_i32_4 = arith.constant 128 : i32
    %11 = vector.broadcast %c128_i32_4 : i32 to vector<8x128xi32>
    %12 = arith.cmpi slt, %10, %11 : vector<8x128xi32>
    %cst = arith.constant 0xFF800000 : f32
    %13 = vector.broadcast %cst : f32 to vector<8x128xf32>
    %14 = arith.select %12, %6, %13 : vector<8x128xi1>, vector<8x128xf32>
    %c0_5 = arith.constant 0 : index
    %c0_6 = arith.constant 0 : index
    %15 = vector.load %arg6[%c0_5, %c0_6] : memref<8x1xf32, #tpu.memory_space<vmem>>, vector<8x1xf32>
    %cst_7 = arith.constant dense<0xFF800000> : vector<8xf32>
    %16 = vector.multi_reduction <maximumf>, %14, %cst_7 [1] : vector<8x128xf32> to vector<8xf32>
    %17 = vector.shape_cast %16 : vector<8xf32> to vector<8x1xf32>
    %18 = arith.maximumf %15, %17 : vector<8x1xf32>
    %c0_8 = arith.constant 0 : index
    %c0_9 = arith.constant 0 : index
    %19 = vector.load %arg7[%c0_8, %c0_9] : memref<8x1xf32, #tpu.memory_space<vmem>>, vector<8x1xf32>
    %20 = arith.subf %15, %18 : vector<8x1xf32>
    %21 = math.exp %20 : vector<8x1xf32>
    %22 = arith.mulf %19, %21 : vector<8x1xf32>
    %23 = vector.broadcast %18 : vector<8x1xf32> to vector<8x128xf32>
    %24 = arith.subf %14, %23 : vector<8x128xf32>
    %25 = math.exp %24 : vector<8x128xf32>
    %cst_10 = arith.constant dense<0.000000e+00> : vector<8xf32>
    %26 = vector.multi_reduction <add>, %25, %cst_10 [1] : vector<8x128xf32> to vector<8xf32>
    %27 = vector.shape_cast %26 : vector<8xf32> to vector<8x1xf32>
    %28 = arith.addf %22, %27 : vector<8x1xf32>
    %c0_11 = arith.constant 0 : index
    %c0_12 = arith.constant 0 : index
    %29 = vector.load %arg7[%c0_11, %c0_12] : memref<8x1xf32, #tpu.memory_space<vmem>>, vector<8x1xf32>
    tpu.vector_store %arg7[%c0_11, %c0_12], %28 {strides = array<i32>} : memref<8x1xf32, #tpu.memory_space<vmem>>, vector<8x1xf32>,
    %c0_13 = arith.constant 0 : index
    %c0_14 = arith.constant 0 : index
    %30 = vector.load %arg6[%c0_13, %c0_14] : memref<8x1xf32, #tpu.memory_space<vmem>>, vector<8x1xf32>
    tpu.vector_store %arg6[%c0_13, %c0_14], %18 {strides = array<i32>} : memref<8x1xf32, #tpu.memory_space<vmem>>, vector<8x1xf32>,
    %c0_15 = arith.constant 0 : index
    %c0_16 = arith.constant 0 : index
    %31 = vector.load %arg4[%c0_15, %c0_16] : memref<8x1xi32, #tpu.memory_space<vmem>>, vector<8x1xi32>
    %32 = vector.broadcast %31 : vector<8x1xi32> to vector<8x128xi32>
    %33 = arith.cmpi eq, %10, %32 : vector<8x128xi32>
    %c0_17 = arith.constant 0 : index
    %c0_18 = arith.constant 0 : index
    %34 = vector.load %arg8[%c0_17, %c0_18] : memref<8x1xf32, #tpu.memory_space<vmem>>, vector<8x1xf32>
    %cst_19 = arith.constant 0.000000e+00 : f32
    %35 = vector.broadcast %cst_19 : f32 to vector<8x128xf32>
    %36 = arith.select %33, %14, %35 : vector<8x128xi1>, vector<8x128xf32>
    %cst_20 = arith.constant dense<0.000000e+00> : vector<8xf32>
    %37 = vector.multi_reduction <add>, %36, %cst_20 [1] : vector<8x128xf32> to vector<8xf32>
    %38 = vector.shape_cast %37 : vector<8xf32> to vector<8x1xf32>
    %39 = arith.addf %34, %38 : vector<8x1xf32>
    %c0_21 = arith.constant 0 : index
    %c0_22 = arith.constant 0 : index
    %40 = vector.load %arg8[%c0_21, %c0_22] : memref<8x1xf32, #tpu.memory_space<vmem>>, vector<8x1xf32>
    tpu.vector_store %arg8[%c0_21, %c0_22], %39 {strides = array<i32>} : memref<8x1xf32, #tpu.memory_space<vmem>>, vector<8x1xf32>,
    %c0_i32_23 = arith.constant 0 : i32
    %41 = arith.cmpi eq, %arg1, %c0_i32_23 : i32
    %42 = arith.extui %41 : i1 to i32
    %c0_i32_24 = arith.constant 0 : i32
    %43 = arith.cmpi ne, %42, %c0_i32_24 : i32
    scf.if %43 {
      %c0_25 = arith.constant 0 : index
      %c0_26 = arith.constant 0 : index
      %44 = vector.load %arg6[%c0_25, %c0_26] : memref<8x1xf32, #tpu.memory_space<vmem>>, vector<8x1xf32>
      %c0_27 = arith.constant 0 : index
      %c0_28 = arith.constant 0 : index
      %45 = vector.load %arg7[%c0_27, %c0_28] : memref<8x1xf32, #tpu.memory_space<vmem>>, vector<8x1xf32>
      %46 = math.log %45 : vector<8x1xf32>
      %47 = arith.addf %44, %46 : vector<8x1xf32>
      %c0_29 = arith.constant 0 : index
      %c0_30 = arith.constant 0 : index
      %48 = vector.load %arg8[%c0_29, %c0_30] : memref<8x1xf32, #tpu.memory_space<vmem>>, vector<8x1xf32>
      %49 = arith.subf %47, %48 : vector<8x1xf32>
      %c0_31 = arith.constant 0 : index
      %c0_32 = arith.constant 0 : index
      %50 = vector.load %arg4[%c0_31, %c0_32] : memref<8x1xi32, #tpu.memory_space<vmem>>, vector<8x1xi32>
      %c0_i32_33 = arith.constant 0 : i32
      %51 = vector.broadcast %c0_i32_33 : i32 to vector<8x1xi32>
      %52 = arith.cmpi sge, %50, %51 : vector<8x1xi32>
      %c0_34 = arith.constant 0 : index
      %c0_35 = arith.constant 0 : index
      %53 = vector.load %arg4[%c0_34, %c0_35] : memref<8x1xi32, #tpu.memory_space<vmem>>, vector<8x1xi32>
      %c128_i32_36 = arith.constant 128 : i32
      %54 = vector.broadcast %c128_i32_36 : i32 to vector<8x1xi32>
      %55 = arith.cmpi slt, %53, %54 : vector<8x1xi32>
      %56 = arith.andi %52, %55 : vector<8x1xi1>
      %cst_37 = arith.constant 0.000000e+00 : f32
      %57 = vector.broadcast %cst_37 : f32 to vector<8x1xf32>
      %58 = arith.select %56, %49, %57 : vector<8x1xi1>, vector<8x1xf32>
      %c0_38 = arith.constant 0 : index
      %c0_39 = arith.constant 0 : index
      %59 = vector.load %arg5[%c0_38, %c0_39] : memref<8x1xf32, #tpu.memory_space<vmem>>, vector<8x1xf32>
      tpu.vector_store %arg5[%c0_38, %c0_39], %58 {strides = array<i32>} : memref<8x1xf32, #tpu.memory_space<vmem>>, vector<8x1xf32>,
    } else {
    }
    return
  }
  func.func @transform_0(%arg0: i32, %arg1: i32) -> (i32, i32) {
    %c0_i32 = arith.constant 0 : i32
    return %arg0, %arg1 : i32, i32
  }
  func.func @transform_1(%arg0: i32, %arg1: i32) -> (i32, i32) {
    %c0_i32 = arith.constant 0 : i32
    %c0_i32_0 = arith.constant 0 : i32
    return %c0_i32, %arg1 : i32, i32
  }
  func.func @transform_2(%arg0: i32, %arg1: i32) -> (i32, i32) {
    %c0_i32 = arith.constant 0 : i32
    %c0_i32_0 = arith.constant 0 : i32
    return %arg0, %c0_i32 : i32, i32
  }
  func.func @transform_3(%arg0: i32, %arg1: i32) -> (i32, i32) {
    %c0_i32 = arith.constant 0 : i32
    %c0_i32_0 = arith.constant 0 : i32
    return %arg0, %c0_i32 : i32, i32
  }
}

</mosaic_0001>

<bundles_post_ra>
// kernel: tpu_custom_call.1
= control target key start
LH: loop header
LB: loop body
LE: loop exit
PB: predicated region body
PF: predicated region fallthrough
CT: control target
= control target key end

     0   :  { %vm18_vm0 = vcmask 7168   ;;  %v104_v2 = vmov -inf   ;;  %v105_v4 = vmov 0   ;;  %v106_v6 = vmov 0.0   ;;  %s146_s0 = inlined_call_operand.vmem [shape: f32[8,128], index: 0, kind: input, shape index: {}]   ;;  %s147_s1 = inlined_call_operand.vmem [shape: f32[1,128], index: 1, kind: input, shape index: {}]   ;;  %s148_s2 = inlined_call_operand.vmem [shape: s32[8,1], index: 2, kind: input, shape index: {}]   ;;  %s149_s3 = inlined_call_operand.vmem [shape: f32[8,1], index: 3, kind: output, shape index: {}]  }
   0x1   :  { %v22_v0 = vld [vmem:[%s146_s0] sm:$0xff]  ;;  %19 = vst.msk [vmem:[#allocation2] sm:$0xff] %vm18_vm0, %v104_v2  ;;  %96 = vset.pattern.permute.xlu0 %v105_v4  ;;  %97 = vset.pattern.permute.xlu1 %v105_v4  ;;  %20 = vst.msk [vmem:[#allocation3] sm:$0xff] %vm18_vm0, %v106_v6  ;;  %v32_v14 = vlaneseq }
   0x2   :  { %v92_v1 = vld [vmem:[%s147_s1] ss:$0 sm:$0xff]  ;;  %21 = vst.msk [vmem:[#allocation4] sm:$0xff] %vm18_vm0, %v106_v6 }
   0x3   :  { %v30_v3 = vadd.f32 %v92_v1, %v22_v0  ;;  %v61_v5 = vld [vmem:[%s148_s2] sm:$0xff]  ;;  %v33_v15 = vand.u32 127, %v32_v14 }
   0x4   :  { %63 = vperm.xlu1 %97, %v61_v5   ;;  %vm83_vm2 = vcmp.ge.s32.totalorder %v61_v5, 0  ;;  %vm84_vm3 = vcmp.lt.s32.totalorder %v61_v5, 128 }
   0x5   :  { %39 = vmax.xlane.f32.xlu0 %v30_v3  ;;  %vm85_vm4 = vmand %vm83_vm2, %vm84_vm3 }
   0x8   :  { %v38_v7 = vld [vmem:[#allocation2] sm:$0xff]  ;;  %v42_v21 = vld [vmem:[#allocation3] sm:$0xff] }
   0x9   :  { %v66_v25 = vld [vmem:[#allocation4] sm:$0xff] }
  0x7f   :  { %v64_v16 = vpop.permute.xlu1 %63 }
  0x80   :  { %vm65_vm1 = vcmp.eq.s32.totalorder %v33_v15, %v64_v16 }
  0x81   :  { %v67_v18 = vsel %vm65_vm1, %v30_v3, 0.0 }
  0x8e   :  { %v40_v8 = vpop.xlane.xlu0 %39 }
  0x8f   :  { %v41_v9 = vmax.f32 %v38_v7, %v40_v8 }
  0x91   :  { %v43_v10 = vsub.f32 %v38_v7, %v41_v9  ;;  %60 = vst.msk [vmem:[#allocation2] sm:$0xff] %vm18_vm0, %v41_v9  ;;  %49 = vperm.xlu0 %96, %v41_v9  }
  0x93   :  { %v44_v19 = vmul.f32 1.442695, %v43_v10 }
  0x98   :  { %v75_v31 = vld [vmem:[#allocation2] sm:$0xff] }
 0x10c   :  { %v50_v11 = vpop.permute.xlu0 %49 }
 0x10d   :  { %v52_v12 = vsub.f32 %v30_v3, %v50_v11 }
 0x10f   :  { %v53_v13 = vmul.f32 1.442695, %v52_v12 }
 0x111   :  { %98 = vpow2.f32 %v53_v13 }
 0x112   :  { %100 = vpow2.f32 %v44_v19 }
 0x11e   :  { %v99_v17 = vpop.eup %98 }
 0x11f   :  { %55 = vadd.xlane.f32.xlu1 %v99_v17  ;;  %v101_v20 = vpop.eup %100 }
 0x120   :  { %v46_v22 = vmul.f32 %v101_v20, %v42_v21 }
 0x123   :  { %68 = vadd.xlane.f32.xlu1 %v67_v18 }
 0x1a8   :  { %v56_v23 = vpop.xlane.xlu1 %55 }
 0x1a9   :  { %v57_v24 = vadd.f32 %v56_v23, %v46_v22 }
 0x1ab   :  { %59 = vst.msk [vmem:[#allocation3] sm:$0xff] %vm18_vm0, %v57_v24 }
 0x1ac   :  { %v69_v26 = vpop.xlane.xlu1 %68 }
 0x1ad   :  { %v70_v27 = vadd.f32 %v69_v26, %v66_v25 }
 0x1af   :  { %71 = vst.msk [vmem:[#allocation4] sm:$0xff] %vm18_vm0, %v70_v27 }
 0x1b2   :  { %v76_v28 = vld [vmem:[#allocation3] sm:$0xff] }
 0x1b3   :  { %102 = vlog2.f32 %v76_v28 }
 0x1b6   :  { %v80_v32 = vld [vmem:[#allocation4] sm:$0xff] }
 0x1c0   :  { %v103_v29 = vpop.eup %102 }
 0x1c1   :  { %v78_v30 = vmul.f32 0.6931472, %v103_v29 }
 0x1c3   :  { %v79_v33 = vadd.f32 %v78_v30, %v75_v31 }
 0x1c5   :  { %v81_v34 = vsub.f32 %v79_v33, %v80_v32 }
 0x1c7   :  { %v86_v35 = vsel %vm85_vm4, %v81_v34, 0.0 }
 0x1c8   :  { %87 = vst.msk [vmem:[%s149_s3] sm:$0xff] %vm18_vm0, %v86_v35 }

</bundles_post_ra>
